<compile_context>
chip_gen: v7x
topology: tpu7x:2x2x1
jax: 0.10.0
libtpu: 0.0.40
codegen_flags: <defaults>
</compile_context>

<pallas_src>
import math
import functools

import jax
import jax.numpy as jnp
from jax.experimental import pallas as pl
from jax.experimental.pallas import tpu as pltpu


def _round_up(v, m):
    return ((v + m - 1) // m) * m


def _choose_tiles(n):
    """Padded node count and (row, reduction) tile sizes for the aggregation."""
    np0 = _round_up(n, 128)
    if np0 <= 256:
        tm = tk = np0                    # tiny graph: single tile
    else:
        tm, tk = 256, 512                # v7x-safe row tile, 512-wide K tile
        np0 = _round_up(np0, 512)        # divisible by both tm and tk
    return np0, tm, tk


# ---------------------------------------------------------------------------
# Kernel 1: feature projection  xw = feat @ w   (bf16 x bf16, f32 accumulation)
# ---------------------------------------------------------------------------
def project_kernel(x_ref, w_ref, o_ref):
    o_ref[...] = jnp.dot(
        x_ref[...], w_ref[...], preferred_element_type=jnp.float32
    ).astype(o_ref.dtype)


def _project(x_p, w_p, *, tm):
    Np, Fp = x_p.shape
    Hp = w_p.shape[1]
    return pl.pallas_call(
        project_kernel,
        out_shape=jax.ShapeDtypeStruct((Np, Hp), jnp.bfloat16),
        grid=(Np // tm,),
        in_specs=[
            pl.BlockSpec((tm, Fp), lambda i: (i, 0)),   # row tile of features
            pl.BlockSpec((Fp, Hp), lambda i: (0, 0)),   # full (small) weight
        ],
        out_specs=pl.BlockSpec((tm, Hp), lambda i: (i, 0)),
        compiler_params=pltpu.CompilerParams(
            dimension_semantics=("parallel",)),
    )(x_p, w_p)


# ---------------------------------------------------------------------------
# Kernel 2: neighbour aggregation (+ReLU, optional fused masked log_softmax)
#   out[i] = relu( sum_k adj[i, k] @ xw[k] )   with K-tiled f32 accumulation
# ---------------------------------------------------------------------------
def gcn_agg_kernel(adj_ref, xw_ref, o_ref, acc_ref, *, n_valid_cols, final):
    k = pl.program_id(1)

    @pl.when(k == 0)
    def _():
        acc_ref[...] = jnp.zeros_like(acc_ref)

    acc_ref[...] += jnp.dot(
        adj_ref[...], xw_ref[...], preferred_element_type=jnp.float32)

    @pl.when(k == pl.num_programs(1) - 1)
    def _():
        h = jnp.maximum(acc_ref[...], 0.0)
        if final:
            # log_softmax over the valid class columns; padded columns are
            # masked to -inf so they contribute nothing to max / sum.
            cols = jax.lax.broadcasted_iota(jnp.int32, h.shape, 1)
            hm = jnp.where(cols < n_valid_cols, h, -jnp.inf)
            m = jnp.max(hm, axis=1, keepdims=True)
            z = hm - m
            lse = jnp.log(jnp.sum(jnp.exp(z), axis=1, keepdims=True))
            h = z - lse
        o_ref[...] = h.astype(o_ref.dtype)


def _aggregate(adj_p, xw_p, *, tm, tk, n_valid_cols, final, out_dtype):
    Np = adj_p.shape[0]
    Hp = xw_p.shape[1]
    kernel = functools.partial(
        gcn_agg_kernel, n_valid_cols=n_valid_cols, final=final)
    return pl.pallas_call(
        kernel,
        out_shape=jax.ShapeDtypeStruct((Np, Hp), out_dtype),
        grid=(Np // tm, Np // tk),
        in_specs=[
            pl.BlockSpec((tm, tk), lambda i, k: (i, k)),   # adj tile (bf16 stream)
            pl.BlockSpec((tk, Hp), lambda i, k: (k, 0)),   # projected features
        ],
        out_specs=pl.BlockSpec((tm, Hp), lambda i, k: (i, 0)),
        scratch_shapes=[pltpu.VMEM((tm, Hp), jnp.float32)],
        compiler_params=pltpu.CompilerParams(
            dimension_semantics=("parallel", "arbitrary")),
    )(adj_p, xw_p)


# ---------------------------------------------------------------------------
# Host-side wrappers
# ---------------------------------------------------------------------------
def prepare_adjacency(adj):
    """Pad + bf16-cast the adjacency ONCE, outside the jitted forward."""
    N = adj.shape[0]
    Np, _, _ = _choose_tiles(N)
    adj_p = jnp.zeros((Np, Np), jnp.bfloat16)
    adj_p = adj_p.at[:N, :N].set(adj.astype(jnp.bfloat16))
    return adj_p


@jax.jit
def node_classification_gcnn(x, adj_p, w1, w2):
    N, F = x.shape
    H = w1.shape[1]
    C = w2.shape[1]
    Np, TM, TK = _choose_tiles(N)
    assert adj_p.shape == (Np, Np)

    Fp = _round_up(F, 128)
    Hp = _round_up(H, 128)
    Cp = _round_up(C, 128)

    # Zero padding is exact: padded rows/cols contribute nothing to the matmuls.
    x_p = jnp.zeros((Np, Fp), jnp.bfloat16).at[:N, :F].set(
        x.astype(jnp.bfloat16))
    w1_p = jnp.zeros((Fp, Hp), jnp.bfloat16).at[:F, :H].set(
        w1.astype(jnp.bfloat16))
    w2_p = jnp.zeros((Hp, Cp), jnp.bfloat16).at[:H, :C].set(
        w2.astype(jnp.bfloat16))

    # Layer 1: project, then aggregate + ReLU.
    xw1 = _project(x_p, w1_p, tm=TM)                                  # (Np, Hp) bf16
    h1 = _aggregate(adj_p, xw1, tm=TM, tk=TK, n_valid_cols=Hp,
                    final=False, out_dtype=jnp.bfloat16)              # (Np, Hp) bf16

    # TODO(synk): F.dropout with training=True would need pltpu.prng_seed +
    # pltpu.stateful_bernoulli; eval-mode (identity) dropout implemented here.

    # Layer 2: project, then aggregate + ReLU + fused masked log_softmax.
    xw2 = _project(h1, w2_p, tm=TM)                                   # (Np, Cp) bf16
    out_p = _aggregate(adj_p, xw2, tm=TM, tk=TK, n_valid_cols=C,
                       final=True, out_dtype=jnp.float32)             # (Np, Cp) f32

    return out_p[:N, :C]


def init_params(key, feature_num, node_representation_dim, nclass):
    """Deterministic re-implementation of GraphConvolution.reset_parameters."""
    k1, k2 = jax.random.split(key)
    stdv1 = 1.0 / math.sqrt(node_representation_dim)
    stdv2 = 1.0 / math.sqrt(nclass)
    w1 = jax.random.uniform(
        k1, (feature_num, node_representation_dim),
        minval=-stdv1, maxval=stdv1, dtype=jnp.float32)
    w2 = jax.random.uniform(
        k2, (node_representation_dim, nclass),
        minval=-stdv2, maxval=stdv2, dtype=jnp.float32)
    return w1, w2


if __name__ == "__main__":
    key = jax.random.PRNGKey(0)
    k_x, k_adj, k_param = jax.random.split(key, 3)

    # Small synthetic graph: N nodes, F input features, H hidden dim, C classes.
    N, F, H, C = 64, 32, 32, 8

    x = jax.random.normal(k_x, (N, F), dtype=jnp.float32)

    # Random symmetric adjacency with self-loops, row-normalized (dense spmm).
    a = (jax.random.uniform(k_adj, (N, N)) < 0.1).astype(jnp.float32)
    a = jnp.maximum(a, a.T) + jnp.eye(N, dtype=jnp.float32)
    adj = a / jnp.sum(a, axis=1, keepdims=True)

    w1, w2 = init_params(k_param, F, H, C)

    # Pad/cast the adjacency once (hoisted out of the jitted forward).
    adj_p = prepare_adjacency(adj)

    out = node_classification_gcnn(x, adj_p, w1, w2)
    jax.block_until_ready(out)

    # Reference check in plain JAX f32 (same eval-mode semantics).  The kernel
    # uses bf16 operands (f32 accumulation), so tolerance reflects bf16
    # rounding.
    h1 = jnp.maximum(adj @ (x @ w1), 0.0)
    h2 = jnp.maximum(adj @ (h1 @ w2), 0.0)
    ref = h2 - jax.scipy.special.logsumexp(h2, axis=1, keepdims=True)
    assert out.shape == (N, C)
    assert bool(jnp.all(jnp.isfinite(out)))
    assert jnp.allclose(out, ref, atol=5e-2, rtol=5e-2), (
        float(jnp.max(jnp.abs(out - ref))))

    print("KERNEL_OK")
</pallas_src>

<mosaic_0001>
module attributes {stable_mosaic.version = 11 : i64} {
  func.func @project_kernel(%arg0: i32, %arg1: memref<128x128xbf16, #tpu.memory_space<vmem>>, %arg2: memref<128x128xbf16, #tpu.memory_space<vmem>>, %arg3: memref<128x128xbf16, #tpu.memory_space<vmem>>) attributes {dimension_semantics = [#tpu.dimension_semantics<parallel>], iteration_bounds = array<i64: 1>, scalar_prefetch = 0 : i64, scratch_operands = 0 : i64, tpu.core_type = #tpu.core_type<tc>, window_params = [{transform_indices = @transform_0, window_bounds = array<i64: 128, 128>}, {pipeline_mode = #tpu.pipeline_mode<synchronous>, transform_indices = @transform_1, window_bounds = array<i64: 128, 128>}, {transform_indices = @transform_2, window_bounds = array<i64: 128, 128>}]} {
    %c0 = arith.constant 0 : index
    %c0_0 = arith.constant 0 : index
    %0 = vector.load %arg1[%c0, %c0_0] : memref<128x128xbf16, #tpu.memory_space<vmem>>, vector<128x128xbf16>
    %c0_1 = arith.constant 0 : index
    %c0_2 = arith.constant 0 : index
    %1 = vector.load %arg2[%c0_1, %c0_2] : memref<128x128xbf16, #tpu.memory_space<vmem>>, vector<128x128xbf16>
    %cst = arith.constant dense<0.000000e+00> : vector<128x128xf32>
    %2 = tpu.matmul %0, %1, %cst {dimension_numbers = #tpu.dot_dimension_numbers<[1], [0], [0], [1], [0, 0, 1, 1], [], []>} : vector<128x128xbf16>, vector<128x128xbf16>, vector<128x128xf32> -> vector<128x128xf32>
    %3 = arith.truncf %2 : vector<128x128xf32> to vector<128x128xbf16>
    %c0_3 = arith.constant 0 : index
    %c0_4 = arith.constant 0 : index
    %4 = vector.load %arg3[%c0_3, %c0_4] : memref<128x128xbf16, #tpu.memory_space<vmem>>, vector<128x128xbf16>
    tpu.vector_store %arg3[%c0_3, %c0_4], %3 {strides = array<i32>} : memref<128x128xbf16, #tpu.memory_space<vmem>>, vector<128x128xbf16>,
    return
  }
  func.func @transform_0(%arg0: i32) -> (i32, i32) {
    %c0_i32 = arith.constant 0 : i32
    %c0_i32_0 = arith.constant 0 : i32
    return %arg0, %c0_i32 : i32, i32
  }
  func.func @transform_1(%arg0: i32) -> (i32, i32) {
    %c0_i32 = arith.constant 0 : i32
    %c0_i32_0 = arith.constant 0 : i32
    %c0_i32_1 = arith.constant 0 : i32
    return %c0_i32, %c0_i32_0 : i32, i32
  }
  func.func @transform_2(%arg0: i32) -> (i32, i32) {
    %c0_i32 = arith.constant 0 : i32
    %c0_i32_0 = arith.constant 0 : i32
    return %arg0, %c0_i32 : i32, i32
  }
}

module attributes {stable_mosaic.version = 11 : i64} {
  func.func @gcn_agg_kernel(%arg0: i32, %arg1: i32, %arg2: memref<128x128xbf16, #tpu.memory_space<vmem>>, %arg3: memref<128x128xbf16, #tpu.memory_space<vmem>>, %arg4: memref<128x128xbf16, #tpu.memory_space<vmem>>, %arg5: memref<128x128xf32, #tpu.memory_space<vmem>>) attributes {dimension_semantics = [#tpu.dimension_semantics<parallel>, #tpu.dimension_semantics<arbitrary>], iteration_bounds = array<i64: 1, 1>, scalar_prefetch = 0 : i64, scratch_operands = 1 : i64, tpu.core_type = #tpu.core_type<tc>, window_params = [{transform_indices = @transform_0, window_bounds = array<i64: 128, 128>}, {transform_indices = @transform_1, window_bounds = array<i64: 128, 128>}, {transform_indices = @transform_2, window_bounds = array<i64: 128, 128>}]} {
    %c0_i32 = arith.constant 0 : i32
    %0 = arith.cmpi eq, %arg1, %c0_i32 : i32
    %1 = arith.extui %0 : i1 to i32
    %c0_i32_0 = arith.constant 0 : i32
    %2 = arith.cmpi ne, %1, %c0_i32_0 : i32
    scf.if %2 {
      %cst_10 = arith.constant 0.000000e+00 : f32
      %12 = vector.broadcast %cst_10 : f32 to vector<128x128xf32>
      %c0_11 = arith.constant 0 : index
      %c0_12 = arith.constant 0 : index
      %13 = vector.load %arg5[%c0_11, %c0_12] : memref<128x128xf32, #tpu.memory_space<vmem>>, vector<128x128xf32>
      tpu.vector_store %arg5[%c0_11, %c0_12], %12 {strides = array<i32>} : memref<128x128xf32, #tpu.memory_space<vmem>>, vector<128x128xf32>,
    } else {
    }
    %c0 = arith.constant 0 : index
    %c0_1 = arith.constant 0 : index
    %3 = vector.load %arg5[%c0, %c0_1] : memref<128x128xf32, #tpu.memory_space<vmem>>, vector<128x128xf32>
    %c0_2 = arith.constant 0 : index
    %c0_3 = arith.constant 0 : index
    %4 = vector.load %arg2[%c0_2, %c0_3] : memref<128x128xbf16, #tpu.memory_space<vmem>>, vector<128x128xbf16>
    %c0_4 = arith.constant 0 : index
    %c0_5 = arith.constant 0 : index
    %5 = vector.load %arg3[%c0_4, %c0_5] : memref<128x128xbf16, #tpu.memory_space<vmem>>, vector<128x128xbf16>
    %cst = arith.constant dense<0.000000e+00> : vector<128x128xf32>
    %6 = tpu.matmul %4, %5, %cst {dimension_numbers = #tpu.dot_dimension_numbers<[1], [0], [0], [1], [0, 0, 1, 1], [], []>} : vector<128x128xbf16>, vector<128x128xbf16>, vector<128x128xf32> -> vector<128x128xf32>
    %7 = arith.addf %3, %6 : vector<128x128xf32>
    %c0_6 = arith.constant 0 : index
    %c0_7 = arith.constant 0 : index
    %8 = vector.load %arg5[%c0_6, %c0_7] : memref<128x128xf32, #tpu.memory_space<vmem>>, vector<128x128xf32>
    tpu.vector_store %arg5[%c0_6, %c0_7], %7 {strides = array<i32>} : memref<128x128xf32, #tpu.memory_space<vmem>>, vector<128x128xf32>,
    %c0_i32_8 = arith.constant 0 : i32
    %9 = arith.cmpi eq, %arg1, %c0_i32_8 : i32
    %10 = arith.extui %9 : i1 to i32
    %c0_i32_9 = arith.constant 0 : i32
    %11 = arith.cmpi ne, %10, %c0_i32_9 : i32
    scf.if %11 {
      %c0_10 = arith.constant 0 : index
      %c0_11 = arith.constant 0 : index
      %12 = vector.load %arg5[%c0_10, %c0_11] : memref<128x128xf32, #tpu.memory_space<vmem>>, vector<128x128xf32>
      %cst_12 = arith.constant 0.000000e+00 : f32
      %13 = vector.broadcast %cst_12 : f32 to vector<128x128xf32>
      %14 = arith.maximumf %12, %13 : vector<128x128xf32>
      %15 = arith.truncf %14 : vector<128x128xf32> to vector<128x128xbf16>
      %c0_13 = arith.constant 0 : index
      %c0_14 = arith.constant 0 : index
      %16 = vector.load %arg4[%c0_13, %c0_14] : memref<128x128xbf16, #tpu.memory_space<vmem>>, vector<128x128xbf16>
      tpu.vector_store %arg4[%c0_13, %c0_14], %15 {strides = array<i32>} : memref<128x128xbf16, #tpu.memory_space<vmem>>, vector<128x128xbf16>,
    } else {
    }
    return
  }
  func.func @transform_0(%arg0: i32, %arg1: i32) -> (i32, i32) {
    %c0_i32 = arith.constant 0 : i32
    return %arg0, %arg1 : i32, i32
  }
  func.func @transform_1(%arg0: i32, %arg1: i32) -> (i32, i32) {
    %c0_i32 = arith.constant 0 : i32
    %c0_i32_0 = arith.constant 0 : i32
    return %arg1, %c0_i32 : i32, i32
  }
  func.func @transform_2(%arg0: i32, %arg1: i32) -> (i32, i32) {
    %c0_i32 = arith.constant 0 : i32
    %c0_i32_0 = arith.constant 0 : i32
    return %arg0, %c0_i32 : i32, i32
  }
}

module attributes {stable_mosaic.version = 11 : i64} {
  func.func @gcn_agg_kernel(%arg0: i32, %arg1: i32, %arg2: memref<128x128xbf16, #tpu.memory_space<vmem>>, %arg3: memref<128x128xbf16, #tpu.memory_space<vmem>>, %arg4: memref<128x128xf32, #tpu.memory_space<vmem>>, %arg5: memref<128x128xf32, #tpu.memory_space<vmem>>) attributes {dimension_semantics = [#tpu.dimension_semantics<parallel>, #tpu.dimension_semantics<arbitrary>], iteration_bounds = array<i64: 1, 1>, scalar_prefetch = 0 : i64, scratch_operands = 1 : i64, tpu.core_type = #tpu.core_type<tc>, window_params = [{transform_indices = @transform_0, window_bounds = array<i64: 128, 128>}, {transform_indices = @transform_1, window_bounds = array<i64: 128, 128>}, {transform_indices = @transform_2, window_bounds = array<i64: 128, 128>}]} {
    %c0_i32 = arith.constant 0 : i32
    %0 = arith.cmpi eq, %arg1, %c0_i32 : i32
    %1 = arith.extui %0 : i1 to i32
    %c0_i32_0 = arith.constant 0 : i32
    %2 = arith.cmpi ne, %1, %c0_i32_0 : i32
    scf.if %2 {
      %cst_10 = arith.constant 0.000000e+00 : f32
      %12 = vector.broadcast %cst_10 : f32 to vector<128x128xf32>
      %c0_11 = arith.constant 0 : index
      %c0_12 = arith.constant 0 : index
      %13 = vector.load %arg5[%c0_11, %c0_12] : memref<128x128xf32, #tpu.memory_space<vmem>>, vector<128x128xf32>
      tpu.vector_store %arg5[%c0_11, %c0_12], %12 {strides = array<i32>} : memref<128x128xf32, #tpu.memory_space<vmem>>, vector<128x128xf32>,
    } else {
    }
    %c0 = arith.constant 0 : index
    %c0_1 = arith.constant 0 : index
    %3 = vector.load %arg5[%c0, %c0_1] : memref<128x128xf32, #tpu.memory_space<vmem>>, vector<128x128xf32>
    %c0_2 = arith.constant 0 : index
    %c0_3 = arith.constant 0 : index
    %4 = vector.load %arg2[%c0_2, %c0_3] : memref<128x128xbf16, #tpu.memory_space<vmem>>, vector<128x128xbf16>
    %c0_4 = arith.constant 0 : index
    %c0_5 = arith.constant 0 : index
    %5 = vector.load %arg3[%c0_4, %c0_5] : memref<128x128xbf16, #tpu.memory_space<vmem>>, vector<128x128xbf16>
    %cst = arith.constant dense<0.000000e+00> : vector<128x128xf32>
    %6 = tpu.matmul %4, %5, %cst {dimension_numbers = #tpu.dot_dimension_numbers<[1], [0], [0], [1], [0, 0, 1, 1], [], []>} : vector<128x128xbf16>, vector<128x128xbf16>, vector<128x128xf32> -> vector<128x128xf32>
    %7 = arith.addf %3, %6 : vector<128x128xf32>
    %c0_6 = arith.constant 0 : index
    %c0_7 = arith.constant 0 : index
    %8 = vector.load %arg5[%c0_6, %c0_7] : memref<128x128xf32, #tpu.memory_space<vmem>>, vector<128x128xf32>
    tpu.vector_store %arg5[%c0_6, %c0_7], %7 {strides = array<i32>} : memref<128x128xf32, #tpu.memory_space<vmem>>, vector<128x128xf32>,
    %c0_i32_8 = arith.constant 0 : i32
    %9 = arith.cmpi eq, %arg1, %c0_i32_8 : i32
    %10 = arith.extui %9 : i1 to i32
    %c0_i32_9 = arith.constant 0 : i32
    %11 = arith.cmpi ne, %10, %c0_i32_9 : i32
    scf.if %11 {
      %c0_10 = arith.constant 0 : index
      %c0_11 = arith.constant 0 : index
      %12 = vector.load %arg5[%c0_10, %c0_11] : memref<128x128xf32, #tpu.memory_space<vmem>>, vector<128x128xf32>
      %cst_12 = arith.constant 0.000000e+00 : f32
      %13 = vector.broadcast %cst_12 : f32 to vector<128x128xf32>
      %14 = arith.maximumf %12, %13 : vector<128x128xf32>
      %15 = tpu.iota {dimensions = array<i32: 1>} : vector<128x128xi32>
      %c8_i32 = arith.constant 8 : i32
      %16 = vector.broadcast %c8_i32 : i32 to vector<128x128xi32>
      %17 = arith.cmpi slt, %15, %16 : vector<128x128xi32>
      %cst_13 = arith.constant 0xFF800000 : f32
      %18 = vector.broadcast %cst_13 : f32 to vector<128x128xf32>
      %19 = arith.select %17, %14, %18 : vector<128x128xi1>, vector<128x128xf32>
      %cst_14 = arith.constant dense<0xFF800000> : vector<128xf32>
      %20 = vector.multi_reduction <maximumf>, %19, %cst_14 [1] : vector<128x128xf32> to vector<128xf32>
      %21 = vector.shape_cast %20 : vector<128xf32> to vector<128x1xf32>
      %22 = vector.broadcast %21 : vector<128x1xf32> to vector<128x128xf32>
      %23 = arith.subf %19, %22 : vector<128x128xf32>
      %24 = math.exp %23 : vector<128x128xf32>
      %cst_15 = arith.constant dense<0.000000e+00> : vector<128xf32>
      %25 = vector.multi_reduction <add>, %24, %cst_15 [1] : vector<128x128xf32> to vector<128xf32>
      %26 = vector.shape_cast %25 : vector<128xf32> to vector<128x1xf32>
      %27 = math.log %26 : vector<128x1xf32>
      %28 = vector.broadcast %27 : vector<128x1xf32> to vector<128x128xf32>
      %29 = arith.subf %23, %28 : vector<128x128xf32>
      %c0_16 = arith.constant 0 : index
      %c0_17 = arith.constant 0 : index
      %30 = vector.load %arg4[%c0_16, %c0_17] : memref<128x128xf32, #tpu.memory_space<vmem>>, vector<128x128xf32>
      tpu.vector_store %arg4[%c0_16, %c0_17], %29 {strides = array<i32>} : memref<128x128xf32, #tpu.memory_space<vmem>>, vector<128x128xf32>,
    } else {
    }
    return
  }
  func.func @transform_0(%arg0: i32, %arg1: i32) -> (i32, i32) {
    %c0_i32 = arith.constant 0 : i32
    return %arg0, %arg1 : i32, i32
  }
  func.func @transform_1(%arg0: i32, %arg1: i32) -> (i32, i32) {
    %c0_i32 = arith.constant 0 : i32
    %c0_i32_0 = arith.constant 0 : i32
    return %arg1, %c0_i32 : i32, i32
  }
  func.func @transform_2(%arg0: i32, %arg1: i32) -> (i32, i32) {
    %c0_i32 = arith.constant 0 : i32
    %c0_i32_0 = arith.constant 0 : i32
    return %arg0, %c0_i32 : i32, i32
  }
}

</mosaic_0001>

<bundles_post_ra>
// kernel: node_classification_gcnn.7
= control target key start
LH: loop header
LB: loop body
LE: loop exit
PB: predicated region body
PF: predicated region fallthrough
CT: control target
= control target key end

     0   :  { %v340_v16 = vlaneseq  ;;  %s925_s1 = inlined_call_operand.vmem [shape: bf16[128,128], index: 1, kind: input, shape index: {}]   ;;  %s926_s0 = inlined_call_operand.vmem [shape: bf16[128,128], index: 0, kind: input, shape index: {}]   ;;  %s927_s2 = inlined_call_operand.vmem [shape: f32[128,128], index: 2, kind: output, shape index: {}]  }
   0x1   :  { %v619_v0 = vld [vmem:[%s925_s1] sm:$0xff]   ;;  %v620_v1 = vld [vmem:[%s925_s1 + $0x8] sm:$0xff]   ;;  %v621_v2 = vld [vmem:[%s925_s1 + $0x10] sm:$0xff]  }
   0x2   :  { %571 = vmatprep.subr.bf16.mxu0 %v619_v0  ;;  %603 = vmatprep.subr.bf16.mxu1 %v619_v0  ;;  %v622_v3 = vld [vmem:[%s925_s1 + $0x18] sm:$0xff]   ;;  %v627_v4 = vld [vmem:[%s926_s0] sm:$0xff]   ;;  %v624_v7 = vld [vmem:[%s925_s1 + $0x28] sm:$0xff]   ;;  %v762_v17 = vand.u32 127, %v340_v16 }
   0x3   :  { %572 = vmatpush3.bf16.msra.mxu0 %v619_v0  ;;  %611 = vmatpush3.bf16.msra.mxu1 %v619_v0  ;;  %v628_v5 = vld [vmem:[%s926_s0 + $0x20] sm:$0xff]   ;;  %v625_v8 = vld [vmem:[%s925_s1 + $0x30] sm:$0xff]   ;;  %v626_v9 = vld [vmem:[%s925_s1 + $0x38] sm:$0xff]  }
   0x4   :  { %573 = vmatprep.subr.bf16.mxu0 %v620_v1  ;;  %604 = vmatprep.subr.bf16.mxu1 %v620_v1  ;;  %v623_v6 = vld [vmem:[%s925_s1 + $0x20] sm:$0xff]   ;;  %v629_v10 = vld [vmem:[%s926_s0 + $0x8] sm:$0xff]   ;;  %v631_v12 = vld [vmem:[%s926_s0 + $0x10] sm:$0xff]   ;;  %vm342_vm0 = vcmp.lt.s32.totalorder %v762_v17, 8 }
   0x5   :  { %587 = vmatprep.mubr.bf16.mxu0 %v627_v4  ;;  %595 = vmatprep.mubr.bf16.mxu1 %v628_v5  ;;  %v630_v11 = vld [vmem:[%s926_s0 + $0x28] sm:$0xff]   ;;  %v633_v13 = vld [vmem:[%s926_s0 + $0x30] sm:$0xff]   ;;  %v632_v14 = vld [vmem:[%s926_s0 + $0x18] sm:$0xff]  }
   0x6   :  { %v634_v15 = vld [vmem:[%s926_s0 + $0x38] sm:$0xff]  }
   0x7   :  { %574 = vmatpush3.bf16.msra.mxu0 %v620_v1  ;;  %612 = vmatpush3.bf16.msra.mxu1 %v620_v1 }
   0x8   :  { %575 = vmatprep.subr.bf16.mxu0 %v621_v2  ;;  %605 = vmatprep.subr.bf16.mxu1 %v621_v2 }
   0xb   :  { %576 = vmatpush3.bf16.msra.mxu0 %v621_v2  ;;  %613 = vmatpush3.bf16.msra.mxu1 %v621_v2 }
   0xc   :  { %577 = vmatprep.subr.bf16.mxu0 %v622_v3  ;;  %606 = vmatprep.subr.bf16.mxu1 %v622_v3 }
   0xf   :  { %578 = vmatpush3.bf16.msra.mxu0 %v622_v3  ;;  %614 = vmatpush3.bf16.msra.mxu1 %v622_v3 }
  0x10   :  { %579 = vmatprep.subr.bf16.mxu0 %v623_v6  ;;  %607 = vmatprep.subr.bf16.mxu1 %v623_v6 }
  0x13   :  { %580 = vmatpush3.bf16.msra.mxu0 %v623_v6  ;;  %615 = vmatpush3.bf16.msra.mxu1 %v623_v6 }
  0x14   :  { %581 = vmatprep.subr.bf16.mxu0 %v624_v7  ;;  %608 = vmatprep.subr.bf16.mxu1 %v624_v7 }
  0x17   :  { %582 = vmatpush3.bf16.msra.mxu0 %v624_v7  ;;  %616 = vmatpush3.bf16.msra.mxu1 %v624_v7 }
  0x18   :  { %583 = vmatprep.subr.bf16.mxu0 %v625_v8  ;;  %609 = vmatprep.subr.bf16.mxu1 %v625_v8 }
  0x1b   :  { %584 = vmatpush3.bf16.msra.mxu0 %v625_v8  ;;  %617 = vmatpush3.bf16.msra.mxu1 %v625_v8 }
  0x1c   :  { %585 = vmatprep.subr.bf16.mxu0 %v626_v9  ;;  %610 = vmatprep.subr.bf16.mxu1 %v626_v9 }
  0x1f   :  { %586 = vmatpush3.bf16.msra.mxu0 %v626_v9  ;;  %618 = vmatpush3.bf16.msra.mxu1 %v626_v9 }
  0x22   :  { %588 = vmatmul.mubr.bf16.vlgmr.msra.gmra.mrb[0].mxu0 %v629_v10  ;;  %596 = vmatmul.mubr.bf16.vlgmr.msra.gmra.mrb[0].mxu1 %v630_v11 }
  0x23   :  { %591 = vmatprep.mubr.bf16.mxu0 %v631_v12  ;;  %599 = vmatprep.mubr.bf16.mxu1 %v633_v13 }
  0x2a   :  { %592 = vmatmul.mubr.bf16.gmra.mrb[4].mxu0 %v632_v14  ;;  %600 = vmatmul.mubr.bf16.gmra.mrb[4].mxu1 %v634_v15 }
  0xf5   :  { %v589_v18 = vpop.f32.mrb[0].mxu0  ;;  %v597_v19 = vpop.f32.mrb[0].mxu1 }
  0xf6   :  { %v326_v20 = vmax.f32 %v589_v18, 0.0  ;;  %v334_v21 = vmax.f32 %v597_v19, 0.0  ;;  %v210_v22 = vpop.f32.mrb[1].mxu0  ;;  %v242_v23 = vpop.f32.mrb[1].mxu1 }
  0xf7   :  { %v590_v24 = vpop.f32.mrb[2].mxu0  ;;  %v598_v25 = vpop.f32.mrb[2].mxu1  ;;  %v324_v26 = vmax.f32 %v210_v22, 0.0  ;;  %v332_v32 = vmax.f32 %v242_v23, 0.0 }
  0xf8   :  { %v327_v27 = vmax.f32 %v590_v24, 0.0  ;;  %v213_v28 = vpop.f32.mrb[3].mxu0  ;;  %v245_v29 = vpop.f32.mrb[3].mxu1  ;;  %v353_v30 = vsel %vm342_vm0, %v334_v21, -inf  ;;  %v345_v31 = vsel %vm342_vm0, %v326_v20, -inf  ;;  %v335_v33 = vmax.f32 %v598_v25, 0.0 }
  0xf9   :  { %379 = vmax.xlane.f32.xlu0 %v353_v30  ;;  %363 = vmax.xlane.f32.xlu1 %v345_v31  ;;  %v343_v34 = vsel %vm342_vm0, %v324_v26, -inf  ;;  %v325_v42 = vmax.f32 %v213_v28, 0.0  ;;  %v333_v43 = vmax.f32 %v245_v29, 0.0  ;;  %v351_v44 = vsel %vm342_vm0, %v332_v32, -inf }
  0xfa   :  { %v346_v35 = vsel %vm342_vm0, %v327_v27, -inf  ;;  %v354_v45 = vsel %vm342_vm0, %v335_v33, -inf }
  0xfb   :  { %v352_v50 = vsel %vm342_vm0, %v333_v43, -inf  ;;  %v344_v51 = vsel %vm342_vm0, %v325_v42, -inf }
  0xfd   :  { %359 = vmax.xlane.f32.xlu0 %v343_v34  ;;  %365 = vmax.xlane.f32.xlu1 %v346_v35  ;;  %v593_v36 = vpop.f32.mrb[4].mxu0  ;;  %v601_v37 = vpop.f32.mrb[4].mxu1 }
  0xfe   :  { %v226_v38 = vpop.f32.mrb[5].mxu0  ;;  %v258_v39 = vpop.f32.mrb[5].mxu1  ;;  %v330_v48 = vmax.f32 %v593_v36, 0.0  ;;  %v338_v62 = vmax.f32 %v601_v37, 0.0 }
  0xff   :  { %v594_v40 = vpop.f32.mrb[6].mxu0  ;;  %v602_v41 = vpop.f32.mrb[6].mxu1  ;;  %v328_v54 = vmax.f32 %v226_v38, 0.0  ;;  %v336_v56 = vmax.f32 %v258_v39, 0.0 }
 0x100   :  { %v229_v46 = vpop.f32.mrb[7].mxu0  ;;  %v261_v47 = vpop.f32.mrb[7].mxu1  ;;  %v331_v49 = vmax.f32 %v594_v40, 0.0  ;;  %v349_v52 = vsel %vm342_vm0, %v330_v48, -inf  ;;  %v339_v63 = vmax.f32 %v602_v41, 0.0  ;;  %v801_v0 = vsel %vm342_vm0, %v338_v62, -inf }
 0x101   :  { %375 = vmax.xlane.f32.xlu0 %v351_v44  ;;  %381 = vmax.xlane.f32.xlu1 %v354_v45  ;;  %v329_v55 = vmax.f32 %v229_v46, 0.0  ;;  %v337_v57 = vmax.f32 %v261_v47, 0.0  ;;  %v347_v58 = vsel %vm342_vm0, %v328_v54, -inf  ;;  %v791_v60 = vsel %vm342_vm0, %v336_v56, -inf }
 0x102   :  { %v350_v53 = vsel %vm342_vm0, %v331_v49, -inf  ;;  %v805_v1 = vsel %vm342_vm0, %v339_v63, -inf }
 0x103   :  { %v348_v59 = vsel %vm342_vm0, %v329_v55, -inf  ;;  %v795_v61 = vsel %vm342_vm0, %v337_v57, -inf }
 0x105   :  { %377 = vmax.xlane.f32.xlu1 %v352_v50  ;;  %361 = vmax.xlane.f32.xlu0 %v344_v51 }
 0x109   :  { %371 = vmax.xlane.f32.xlu0 %v349_v52  ;;  %373 = vmax.xlane.f32.xlu1 %v350_v53 }
 0x10d   :  { %367 = vmax.xlane.f32.xlu0 %v347_v58  ;;  %369 = vmax.xlane.f32.xlu1 %v348_v59 }
 0x111   :  { %383 = vmax.xlane.f32.xlu0 %v791_v60  ;;  %385 = vmax.xlane.f32.xlu1 %v795_v61 }
 0x115   :  { %387 = vmax.xlane.f32.xlu0 %v801_v0  ;;  %389 = vmax.xlane.f32.xlu1 %v805_v1 }
 0x186   :  { %v380_v2 = vpop.xlane.xlu0 %379  ;;  %v364_v3 = vpop.xlane.xlu1 %363 }
 0x187   :  { %v809_v4 = vsub.f32 %v353_v30, %v380_v2  ;;  %v811_v5 = vsub.f32 %v345_v31, %v364_v3 }
 0x189   :  { %v411_v6 = vmul.f32 1.442695, %v811_v5  ;;  %v427_v9 = vmul.f32 1.442695, %v809_v4 }
 0x18a   :  { %v360_v7 = vpop.xlane.xlu0 %359  ;;  %v366_v8 = vpop.xlane.xlu1 %365 }
 0x18b   :  { %v815_v10 = vsub.f32 %v343_v34, %v360_v7  ;;  %v817_v11 = vsub.f32 %v346_v35, %v366_v8  ;;  %635 = vpow2.f32 %v411_v6 }
 0x18c   :  { %637 = vpow2.f32 %v427_v9 }
 0x18d   :  { %v413_v12 = vmul.f32 1.442695, %v817_v11  ;;  %v407_v15 = vmul.f32 1.442695, %v815_v10 }
 0x18e   :  { %v376_v13 = vpop.xlane.xlu0 %375  ;;  %v382_v14 = vpop.xlane.xlu1 %381 }
 0x18f   :  { %v821_v16 = vsub.f32 %v351_v44, %v376_v13  ;;  %v823_v17 = vsub.f32 %v354_v45, %v382_v14  ;;  %639 = vpow2.f32 %v413_v12 }
 0x190   :  { %641 = vpow2.f32 %v407_v15 }
 0x191   :  { %v429_v18 = vmul.f32 1.442695, %v823_v17  ;;  %v423_v21 = vmul.f32 1.442695, %v821_v16 }
 0x192   :  { %v378_v19 = vpop.xlane.xlu1 %377  ;;  %v362_v20 = vpop.xlane.xlu0 %361 }
 0x193   :  { %v827_v22 = vsub.f32 %v344_v51, %v362_v20  ;;  %643 = vpow2.f32 %v429_v18  ;;  %v829_v23 = vsub.f32 %v352_v50, %v378_v19 }
 0x194   :  { %645 = vpow2.f32 %v423_v21 }
 0x195   :  { %v409_v24 = vmul.f32 1.442695, %v827_v22  ;;  %v636_v25 = vpop.eup %635  ;;  %v425_v29 = vmul.f32 1.442695, %v829_v23 }
 0x196   :  { %v372_v26 = vpop.xlane.xlu0 %371  ;;  %v374_v27 = vpop.xlane.xlu1 %373  ;;  %443 = vadd.xlane.f32.xlu0 %v636_v25 }
 0x197   :  { %v832_v28 = vsub.f32 %v349_v52, %v372_v26  ;;  %647 = vpow2.f32 %v409_v24  ;;  %v835_v30 = vsub.f32 %v350_v53, %v374_v27  ;;  %v638_v31 = vpop.eup %637 }
 0x199   :  { %v419_v32 = vmul.f32 1.442695, %v832_v28  ;;  %v640_v33 = vpop.eup %639  ;;  %v421_v37 = vmul.f32 1.442695, %v835_v30 }
 0x19a   :  { %v368_v34 = vpop.xlane.xlu0 %367  ;;  %v370_v35 = vpop.xlane.xlu1 %369  ;;  %459 = vadd.xlane.f32.xlu0 %v638_v31  ;;  %445 = vadd.xlane.f32.xlu1 %v640_v33 }
 0x19b   :  { %649 = vpow2.f32 %v419_v32  ;;  %v838_v36 = vsub.f32 %v347_v58, %v368_v34  ;;  %v841_v38 = vsub.f32 %v348_v59, %v370_v35  ;;  %v642_v39 = vpop.eup %641 }
 0x19c   :  { %651 = vpow2.f32 %v425_v29 }
 0x19d   :  { %v415_v40 = vmul.f32 1.442695, %v838_v36  ;;  %v644_v41 = vpop.eup %643  ;;  %v417_v45 = vmul.f32 1.442695, %v841_v38 }
 0x19e   :  { %v384_v42 = vpop.xlane.xlu0 %383  ;;  %v386_v43 = vpop.xlane.xlu1 %385  ;;  %439 = vadd.xlane.f32.xlu0 %v642_v39  ;;  %461 = vadd.xlane.f32.xlu1 %v644_v41 }
 0x19f   :  { %653 = vpow2.f32 %v415_v40  ;;  %v845_v44 = vsub.f32 %v791_v60, %v384_v42  ;;  %v849_v46 = vsub.f32 %v795_v61, %v386_v43  ;;  %v646_v47 = vpop.eup %645 }
 0x1a0   :  { %655 = vpow2.f32 %v421_v37 }
 0x1a1   :  { %v431_v48 = vmul.f32 1.442695, %v845_v44  ;;  %v648_v49 = vpop.eup %647  ;;  %v433_v53 = vmul.f32 1.442695, %v849_v46 }
 0x1a2   :  { %v388_v50 = vpop.xlane.xlu0 %387  ;;  %v390_v51 = vpop.xlane.xlu1 %389  ;;  %455 = vadd.xlane.f32.xlu0 %v646_v47  ;;  %441 = vadd.xlane.f32.xlu1 %v648_v49 }
 0x1a3   :  { %657 = vpow2.f32 %v431_v48  ;;  %v853_v52 = vsub.f32 %v801_v0, %v388_v50  ;;  %v857_v54 = vsub.f32 %v805_v1, %v390_v51 }
 0x1a4   :  { %659 = vpow2.f32 %v417_v45 }
 0x1a5   :  { %v650_v55 = vpop.eup %649  ;;  %v435_v56 = vmul.f32 1.442695, %v853_v52  ;;  %v437_v58 = vmul.f32 1.442695, %v857_v54 }
 0x1a6   :  { %v652_v57 = vpop.eup %651  ;;  %451 = vadd.xlane.f32.xlu0 %v650_v55 }
 0x1a7   :  { %661 = vpow2.f32 %v435_v56  ;;  %457 = vadd.xlane.f32.xlu1 %v652_v57 }
 0x1a8   :  { %663 = vpow2.f32 %v433_v53 }
 0x1a9   :  { %v654_v59 = vpop.eup %653  ;;  %665 = vpow2.f32 %v437_v58 }
 0x1aa   :  { %v656_v60 = vpop.eup %655  ;;  %447 = vadd.xlane.f32.xlu0 %v654_v59 }
 0x1ab   :  { %453 = vadd.xlane.f32.xlu1 %v656_v60 }
 0x1ad   :  { %v658_v61 = vpop.eup %657 }
 0x1ae   :  { %v660_v62 = vpop.eup %659  ;;  %463 = vadd.xlane.f32.xlu0 %v658_v61 }
 0x1af   :  { %449 = vadd.xlane.f32.xlu1 %v660_v62 }
 0x1b1   :  { %v662_v63 = vpop.eup %661 }
 0x1b2   :  { %v664_v0 = vpop.eup %663  ;;  %467 = vadd.xlane.f32.xlu0 %v662_v63 }
 0x1b3   :  { %465 = vadd.xlane.f32.xlu1 %v664_v0  ;;  %v666_v1 = vpop.eup %665 }
 0x1b7   :  { %469 = vadd.xlane.f32.xlu1 %v666_v1 }
 0x223   :  { %v444_v2 = vpop.xlane.xlu0 %443 }
 0x224   :  { %667 = vlog2.f32 %v444_v2 }
 0x227   :  { %v460_v3 = vpop.xlane.xlu0 %459  ;;  %v446_v6 = vpop.xlane.xlu1 %445 }
 0x228   :  { %669 = vlog2.f32 %v460_v3 }
 0x229   :  { %671 = vlog2.f32 %v446_v6 }
 0x22b   :  { %v440_v7 = vpop.xlane.xlu0 %439  ;;  %v462_v8 = vpop.xlane.xlu1 %461 }
 0x22c   :  { %673 = vlog2.f32 %v440_v7 }
 0x22d   :  { %675 = vlog2.f32 %v462_v8 }
 0x22e   :  { %v668_v9 = vpop.eup %667 }
 0x22f   :  { %v476_v12 = vmul.f32 0.6931472, %v668_v9  ;;  %v456_v13 = vpop.xlane.xlu0 %455  ;;  %v442_v14 = vpop.xlane.xlu1 %441 }
 0x230   :  { %677 = vlog2.f32 %v456_v13 }
 0x231   :  { %v505_v15 = vsub.f32 %v811_v5, %v476_v12  ;;  %679 = vlog2.f32 %v442_v14 }
 0x232   :  { %v670_v18 = vpop.eup %669 }
 0x233   :  { %v672_v19 = vpop.eup %671  ;;  %521 = vst [vmem:[%s927_s2 + $0x10] sm:$0xff] %v505_v15  ;;  %v492_v20 = vmul.f32 0.6931472, %v670_v18  ;;  %v452_v21 = vpop.xlane.xlu0 %451 }
 0x234   :  { %v458_v24 = vpop.xlane.xlu1 %457  ;;  %v478_v25 = vmul.f32 0.6931472, %v672_v19  ;;  %681 = vlog2.f32 %v452_v21 }
 0x235   :  { %v513_v26 = vsub.f32 %v809_v4, %v492_v20  ;;  %683 = vlog2.f32 %v458_v24 }
 0x236   :  { %v674_v27 = vpop.eup %673  ;;  %v506_v29 = vsub.f32 %v817_v11, %v478_v25 }
 0x237   :  { %v676_v31 = vpop.eup %675  ;;  %529 = vst [vmem:[%s927_s2 + $0x50] sm:$0xff] %v513_v26  ;;  %v472_v5 = vmul.f32 0.6931472, %v674_v27  ;;  %v448_v32 = vpop.xlane.xlu0 %447 }
 0x238   :  { %v454_v33 = vpop.xlane.xlu1 %453  ;;  %522 = vst [vmem:[%s927_s2 + $0x18] sm:$0xff] %v506_v29  ;;  %v494_v34 = vmul.f32 0.6931472, %v676_v31  ;;  %685 = vlog2.f32 %v448_v32 }
 0x239   :  { %v503_v4 = vsub.f32 %v815_v10, %v472_v5  ;;  %687 = vlog2.f32 %v454_v33 }
 0x23a   :  { %v678_v35 = vpop.eup %677  ;;  %v514_v11 = vsub.f32 %v823_v17, %v494_v34 }
 0x23b   :  { %v680_v37 = vpop.eup %679  ;;  %519 = vst [vmem:[%s927_s2] sm:$0xff] %v503_v4  ;;  %v488_v39 = vmul.f32 0.6931472, %v678_v35  ;;  %v464_v40 = vpop.xlane.xlu0 %463 }
 0x23c   :  { %v450_v41 = vpop.xlane.xlu1 %449  ;;  %530 = vst [vmem:[%s927_s2 + $0x58] sm:$0xff] %v514_v11  ;;  %v474_v42 = vmul.f32 0.6931472, %v680_v37  ;;  %689 = vlog2.f32 %v464_v40 }
 0x23d   :  { %v511_v10 = vsub.f32 %v821_v16, %v488_v39  ;;  %691 = vlog2.f32 %v450_v41 }
 0x23e   :  { %v682_v43 = vpop.eup %681  ;;  %v504_v17 = vsub.f32 %v827_v22, %v474_v42 }
 0x23f   :  { %v684_v45 = vpop.eup %683  ;;  %527 = vst [vmem:[%s927_s2 + $0x40] sm:$0xff] %v511_v10  ;;  %v484_v47 = vmul.f32 0.6931472, %v682_v43  ;;  %v468_v48 = vpop.xlane.xlu0 %467 }
 0x240   :  { %v466_v49 = vpop.xlane.xlu1 %465  ;;  %520 = vst [vmem:[%s927_s2 + $0x8] sm:$0xff] %v504_v17  ;;  %v490_v50 = vmul.f32 0.6931472, %v684_v45  ;;  %693 = vlog2.f32 %v468_v48 }
 0x241   :  { %v509_v16 = vsub.f32 %v832_v28, %v484_v47  ;;  %695 = vlog2.f32 %v466_v49 }
 0x242   :  { %v686_v51 = vpop.eup %685  ;;  %v512_v22 = vsub.f32 %v829_v23, %v490_v50 }
 0x243   :  { %v688_v53 = vpop.eup %687  ;;  %525 = vst [vmem:[%s927_s2 + $0x30] sm:$0xff] %v509_v16  ;;  %v480_v55 = vmul.f32 0.6931472, %v686_v51 }
 0x244   :  { %v470_v56 = vpop.xlane.xlu1 %469  ;;  %528 = vst [vmem:[%s927_s2 + $0x48] sm:$0xff] %v512_v22  ;;  %v486_v57 = vmul.f32 0.6931472, %v688_v53 }
 0x245   :  { %697 = vlog2.f32 %v470_v56  ;;  %v507_v58 = vsub.f32 %v838_v36, %v480_v55 }
 0x246   :  { %v690_v28 = vpop.eup %689  ;;  %v510_v59 = vsub.f32 %v835_v30, %v486_v57 }
 0x247   :  { %v692_v60 = vpop.eup %691  ;;  %523 = vst [vmem:[%s927_s2 + $0x20] sm:$0xff] %v507_v58  ;;  %v496_v23 = vmul.f32 0.6931472, %v690_v28 }
 0x248   :  { %526 = vst [vmem:[%s927_s2 + $0x38] sm:$0xff] %v510_v59  ;;  %v482_v61 = vmul.f32 0.6931472, %v692_v60 }
 0x249   :  { %v515_v62 = vsub.f32 %v845_v44, %v496_v23 }
 0x24a   :  { %v694_v63 = vpop.eup %693  ;;  %v508_v0 = vsub.f32 %v841_v38, %v482_v61 }
 0x24b   :  { %v696_v36 = vpop.eup %695  ;;  %531 = vst [vmem:[%s927_s2 + $0x60] sm:$0xff] %v515_v62  ;;  %v500_v30 = vmul.f32 0.6931472, %v694_v63 }
 0x24c   :  { %524 = vst [vmem:[%s927_s2 + $0x28] sm:$0xff] %v508_v0  ;;  %v498_v1 = vmul.f32 0.6931472, %v696_v36 }
 0x24d   :  { %v517_v2 = vsub.f32 %v853_v52, %v500_v30 }
 0x24e   :  { %v516_v6 = vsub.f32 %v849_v46, %v498_v1 }
 0x24f   :  { %v698_v3 = vpop.eup %697  ;;  %533 = vst [vmem:[%s927_s2 + $0x70] sm:$0xff] %v517_v2 }
 0x250   :  { %v502_v38 = vmul.f32 0.6931472, %v698_v3  ;;  %532 = vst [vmem:[%s927_s2 + $0x68] sm:$0xff] %v516_v6 }
 0x252   :  { %v518_v44 = vsub.f32 %v857_v54, %v502_v38 }
 0x254   :  { %534 = vst [vmem:[%s927_s2 + $0x78] sm:$0xff] %v518_v44 }

// kernel: node_classification_gcnn.4
= control target key start
LH: loop header
LB: loop body
LE: loop exit
PB: predicated region body
PF: predicated region fallthrough
CT: control target
= control target key end

     0   :  { %s583_s1 = inlined_call_operand.vmem [shape: bf16[128,128], index: 1, kind: input, shape index: {}]   ;;  %s584_s0 = inlined_call_operand.vmem [shape: bf16[128,128], index: 0, kind: input, shape index: {}]   ;;  %s585_s2 = inlined_call_operand.vmem [shape: bf16[128,128], index: 2, kind: output, shape index: {}]  }
   0x1   :  { %v480_v0 = vld [vmem:[%s583_s1] sm:$0xff]   ;;  %v481_v1 = vld [vmem:[%s583_s1 + $0x8] sm:$0xff]   ;;  %v482_v2 = vld [vmem:[%s583_s1 + $0x10] sm:$0xff]  }
   0x2   :  { %432 = vmatprep.subr.bf16.mxu0 %v480_v0  ;;  %464 = vmatprep.subr.bf16.mxu1 %v480_v0  ;;  %v483_v3 = vld [vmem:[%s583_s1 + $0x18] sm:$0xff]   ;;  %v488_v4 = vld [vmem:[%s584_s0] sm:$0xff]   ;;  %v485_v7 = vld [vmem:[%s583_s1 + $0x28] sm:$0xff]  }
   0x3   :  { %433 = vmatpush3.bf16.msra.mxu0 %v480_v0  ;;  %472 = vmatpush3.bf16.msra.mxu1 %v480_v0  ;;  %v489_v5 = vld [vmem:[%s584_s0 + $0x20] sm:$0xff]   ;;  %v486_v8 = vld [vmem:[%s583_s1 + $0x30] sm:$0xff]   ;;  %v487_v9 = vld [vmem:[%s583_s1 + $0x38] sm:$0xff]  }
   0x4   :  { %434 = vmatprep.subr.bf16.mxu0 %v481_v1  ;;  %465 = vmatprep.subr.bf16.mxu1 %v481_v1  ;;  %v484_v6 = vld [vmem:[%s583_s1 + $0x20] sm:$0xff]   ;;  %v490_v10 = vld [vmem:[%s584_s0 + $0x8] sm:$0xff]   ;;  %v492_v12 = vld [vmem:[%s584_s0 + $0x10] sm:$0xff]  }
   0x5   :  { %448 = vmatprep.mubr.bf16.mxu0 %v488_v4  ;;  %456 = vmatprep.mubr.bf16.mxu1 %v489_v5  ;;  %v491_v11 = vld [vmem:[%s584_s0 + $0x28] sm:$0xff]   ;;  %v493_v13 = vld [vmem:[%s584_s0 + $0x30] sm:$0xff]   ;;  %v494_v14 = vld [vmem:[%s584_s0 + $0x18] sm:$0xff]  }
   0x6   :  { %v495_v15 = vld [vmem:[%s584_s0 + $0x38] sm:$0xff]  }
   0x7   :  { %435 = vmatpush3.bf16.msra.mxu0 %v481_v1  ;;  %473 = vmatpush3.bf16.msra.mxu1 %v481_v1 }
   0x8   :  { %436 = vmatprep.subr.bf16.mxu0 %v482_v2  ;;  %466 = vmatprep.subr.bf16.mxu1 %v482_v2 }
   0xb   :  { %437 = vmatpush3.bf16.msra.mxu0 %v482_v2  ;;  %474 = vmatpush3.bf16.msra.mxu1 %v482_v2 }
   0xc   :  { %438 = vmatprep.subr.bf16.mxu0 %v483_v3  ;;  %467 = vmatprep.subr.bf16.mxu1 %v483_v3 }
   0xf   :  { %439 = vmatpush3.bf16.msra.mxu0 %v483_v3  ;;  %475 = vmatpush3.bf16.msra.mxu1 %v483_v3 }
  0x10   :  { %440 = vmatprep.subr.bf16.mxu0 %v484_v6  ;;  %468 = vmatprep.subr.bf16.mxu1 %v484_v6 }
  0x13   :  { %441 = vmatpush3.bf16.msra.mxu0 %v484_v6  ;;  %476 = vmatpush3.bf16.msra.mxu1 %v484_v6 }
  0x14   :  { %442 = vmatprep.subr.bf16.mxu0 %v485_v7  ;;  %469 = vmatprep.subr.bf16.mxu1 %v485_v7 }
  0x17   :  { %443 = vmatpush3.bf16.msra.mxu0 %v485_v7  ;;  %477 = vmatpush3.bf16.msra.mxu1 %v485_v7 }
  0x18   :  { %444 = vmatprep.subr.bf16.mxu0 %v486_v8  ;;  %470 = vmatprep.subr.bf16.mxu1 %v486_v8 }
  0x1b   :  { %445 = vmatpush3.bf16.msra.mxu0 %v486_v8  ;;  %478 = vmatpush3.bf16.msra.mxu1 %v486_v8 }
  0x1c   :  { %446 = vmatprep.subr.bf16.mxu0 %v487_v9  ;;  %471 = vmatprep.subr.bf16.mxu1 %v487_v9 }
  0x1f   :  { %447 = vmatpush3.bf16.msra.mxu0 %v487_v9  ;;  %479 = vmatpush3.bf16.msra.mxu1 %v487_v9 }
  0x22   :  { %449 = vmatmul.mubr.bf16.vlgmr.msra.gmra.mrb[0].mxu0 %v490_v10  ;;  %457 = vmatmul.mubr.bf16.vlgmr.msra.gmra.mrb[0].mxu1 %v491_v11 }
  0x23   :  { %452 = vmatprep.mubr.bf16.mxu0 %v492_v12  ;;  %460 = vmatprep.mubr.bf16.mxu1 %v493_v13 }
  0x2a   :  { %453 = vmatmul.mubr.bf16.gmra.mrb[4].mxu0 %v494_v14  ;;  %461 = vmatmul.mubr.bf16.gmra.mrb[4].mxu1 %v495_v15 }
  0xf5   :  { %v450_v16 = vpop.f32.mrb[0].mxu0  ;;  %v458_v17 = vpop.f32.mrb[0].mxu1 }
  0xf6   :  { %v174_v18 = vpop.f32.mrb[1].mxu0  ;;  %v206_v19 = vpop.f32.mrb[1].mxu1 }
  0xf7   :  { %v451_v20 = vpop.f32.mrb[2].mxu0  ;;  %v459_v21 = vpop.f32.mrb[2].mxu1 }
  0xf8   :  { %v377_v22 = vpack.c.bf16 %v451_v20, %v450_v16  ;;  %v397_v23 = vpack.c.bf16 %v459_v21, %v458_v17  ;;  %v177_v24 = vpop.f32.mrb[3].mxu0  ;;  %v209_v25 = vpop.f32.mrb[3].mxu1 }
  0xf9   :  { %v372_v26 = vpack.c.bf16 %v177_v24, %v174_v18  ;;  %v392_v27 = vpack.c.bf16 %v209_v25, %v206_v19 }
  0xfa   :  { %409 = vst [vmem:[%s585_s2 + $0x8] sm:$0xff] %v377_v22   ;;  %413 = vst [vmem:[%s585_s2 + $0x28] sm:$0xff] %v397_v23  }
  0xfb   :  { %373 = vst [vmem:[%s585_s2] sm:$0xff] %v372_v26   ;;  %412 = vst [vmem:[%s585_s2 + $0x20] sm:$0xff] %v392_v27  }
  0xfd   :  { %v454_v28 = vpop.f32.mrb[4].mxu0  ;;  %v462_v29 = vpop.f32.mrb[4].mxu1 }
  0xfe   :  { %v190_v30 = vpop.f32.mrb[5].mxu0  ;;  %v222_v31 = vpop.f32.mrb[5].mxu1 }
  0xff   :  { %v455_v32 = vpop.f32.mrb[6].mxu0  ;;  %v463_v33 = vpop.f32.mrb[6].mxu1 }
 0x100   :  { %v387_v34 = vpack.c.bf16 %v455_v32, %v454_v28  ;;  %v407_v35 = vpack.c.bf16 %v463_v33, %v462_v29  ;;  %v193_v36 = vpop.f32.mrb[7].mxu0  ;;  %v225_v37 = vpop.f32.mrb[7].mxu1 }
 0x101   :  { %v382_v38 = vpack.c.bf16 %v193_v36, %v190_v30  ;;  %v402_v39 = vpack.c.bf16 %v225_v37, %v222_v31 }
 0x102   :  { %411 = vst [vmem:[%s585_s2 + $0x18] sm:$0xff] %v387_v34   ;;  %415 = vst [vmem:[%s585_s2 + $0x38] sm:$0xff] %v407_v35  }
 0x103   :  { %410 = vst [vmem:[%s585_s2 + $0x10] sm:$0xff] %v382_v38   ;;  %414 = vst [vmem:[%s585_s2 + $0x30] sm:$0xff] %v402_v39  }

// kernel: node_classification_gcnn.5
= control target key start
LH: loop header
LB: loop body
LE: loop exit
PB: predicated region body
PF: predicated region fallthrough
CT: control target
= control target key end

     0   :  { %s686_s1 = inlined_call_operand.vmem [shape: bf16[128,128], index: 1, kind: input, shape index: {}]   ;;  %s687_s0 = inlined_call_operand.vmem [shape: bf16[128,128], index: 0, kind: input, shape index: {}]   ;;  %s688_s2 = inlined_call_operand.vmem [shape: bf16[128,128], index: 2, kind: output, shape index: {}]  }
   0x1   :  { %v583_v0 = vld [vmem:[%s686_s1] sm:$0xff]   ;;  %v584_v1 = vld [vmem:[%s686_s1 + $0x8] sm:$0xff]   ;;  %v585_v2 = vld [vmem:[%s686_s1 + $0x10] sm:$0xff]  }
   0x2   :  { %535 = vmatprep.subr.bf16.mxu0 %v583_v0  ;;  %567 = vmatprep.subr.bf16.mxu1 %v583_v0  ;;  %v586_v3 = vld [vmem:[%s686_s1 + $0x18] sm:$0xff]   ;;  %v591_v4 = vld [vmem:[%s687_s0] sm:$0xff]   ;;  %v588_v7 = vld [vmem:[%s686_s1 + $0x28] sm:$0xff]  }
   0x3   :  { %536 = vmatpush3.bf16.msra.mxu0 %v583_v0  ;;  %575 = vmatpush3.bf16.msra.mxu1 %v583_v0  ;;  %v592_v5 = vld [vmem:[%s687_s0 + $0x20] sm:$0xff]   ;;  %v589_v8 = vld [vmem:[%s686_s1 + $0x30] sm:$0xff]   ;;  %v590_v9 = vld [vmem:[%s686_s1 + $0x38] sm:$0xff]  }
   0x4   :  { %537 = vmatprep.subr.bf16.mxu0 %v584_v1  ;;  %568 = vmatprep.subr.bf16.mxu1 %v584_v1  ;;  %v587_v6 = vld [vmem:[%s686_s1 + $0x20] sm:$0xff]   ;;  %v593_v10 = vld [vmem:[%s687_s0 + $0x8] sm:$0xff]   ;;  %v595_v12 = vld [vmem:[%s687_s0 + $0x10] sm:$0xff]  }
   0x5   :  { %551 = vmatprep.mubr.bf16.mxu0 %v591_v4  ;;  %559 = vmatprep.mubr.bf16.mxu1 %v592_v5  ;;  %v594_v11 = vld [vmem:[%s687_s0 + $0x28] sm:$0xff]   ;;  %v596_v13 = vld [vmem:[%s687_s0 + $0x30] sm:$0xff]   ;;  %v597_v14 = vld [vmem:[%s687_s0 + $0x18] sm:$0xff]  }
   0x6   :  { %v598_v15 = vld [vmem:[%s687_s0 + $0x38] sm:$0xff]  }
   0x7   :  { %538 = vmatpush3.bf16.msra.mxu0 %v584_v1  ;;  %576 = vmatpush3.bf16.msra.mxu1 %v584_v1 }
   0x8   :  { %539 = vmatprep.subr.bf16.mxu0 %v585_v2  ;;  %569 = vmatprep.subr.bf16.mxu1 %v585_v2 }
   0xb   :  { %540 = vmatpush3.bf16.msra.mxu0 %v585_v2  ;;  %577 = vmatpush3.bf16.msra.mxu1 %v585_v2 }
   0xc   :  { %541 = vmatprep.subr.bf16.mxu0 %v586_v3  ;;  %570 = vmatprep.subr.bf16.mxu1 %v586_v3 }
   0xf   :  { %542 = vmatpush3.bf16.msra.mxu0 %v586_v3  ;;  %578 = vmatpush3.bf16.msra.mxu1 %v586_v3 }
  0x10   :  { %543 = vmatprep.subr.bf16.mxu0 %v587_v6  ;;  %571 = vmatprep.subr.bf16.mxu1 %v587_v6 }
  0x13   :  { %544 = vmatpush3.bf16.msra.mxu0 %v587_v6  ;;  %579 = vmatpush3.bf16.msra.mxu1 %v587_v6 }
  0x14   :  { %545 = vmatprep.subr.bf16.mxu0 %v588_v7  ;;  %572 = vmatprep.subr.bf16.mxu1 %v588_v7 }
  0x17   :  { %546 = vmatpush3.bf16.msra.mxu0 %v588_v7  ;;  %580 = vmatpush3.bf16.msra.mxu1 %v588_v7 }
  0x18   :  { %547 = vmatprep.subr.bf16.mxu0 %v589_v8  ;;  %573 = vmatprep.subr.bf16.mxu1 %v589_v8 }
  0x1b   :  { %548 = vmatpush3.bf16.msra.mxu0 %v589_v8  ;;  %581 = vmatpush3.bf16.msra.mxu1 %v589_v8 }
  0x1c   :  { %549 = vmatprep.subr.bf16.mxu0 %v590_v9  ;;  %574 = vmatprep.subr.bf16.mxu1 %v590_v9 }
  0x1f   :  { %550 = vmatpush3.bf16.msra.mxu0 %v590_v9  ;;  %582 = vmatpush3.bf16.msra.mxu1 %v590_v9 }
  0x22   :  { %552 = vmatmul.mubr.bf16.vlgmr.msra.gmra.mrb[0].mxu0 %v593_v10  ;;  %560 = vmatmul.mubr.bf16.vlgmr.msra.gmra.mrb[0].mxu1 %v594_v11 }
  0x23   :  { %555 = vmatprep.mubr.bf16.mxu0 %v595_v12  ;;  %563 = vmatprep.mubr.bf16.mxu1 %v596_v13 }
  0x2a   :  { %556 = vmatmul.mubr.bf16.gmra.mrb[4].mxu0 %v597_v14  ;;  %564 = vmatmul.mubr.bf16.gmra.mrb[4].mxu1 %v598_v15 }
  0xf5   :  { %v553_v16 = vpop.f32.mrb[0].mxu0  ;;  %v561_v17 = vpop.f32.mrb[0].mxu1 }
  0xf6   :  { %v210_v18 = vpop.f32.mrb[1].mxu0  ;;  %v242_v19 = vpop.f32.mrb[1].mxu1  ;;  %v326_v22 = vmax.f32 %v553_v16, 0.0  ;;  %v334_v23 = vmax.f32 %v561_v17, 0.0 }
  0xf7   :  { %v554_v20 = vpop.f32.mrb[2].mxu0  ;;  %v562_v21 = vpop.f32.mrb[2].mxu1  ;;  %v324_v28 = vmax.f32 %v210_v18, 0.0  ;;  %v332_v29 = vmax.f32 %v242_v19, 0.0 }
  0xf8   :  { %v327_v24 = vmax.f32 %v554_v20, 0.0  ;;  %v335_v25 = vmax.f32 %v562_v21, 0.0  ;;  %v213_v26 = vpop.f32.mrb[3].mxu0  ;;  %v245_v27 = vpop.f32.mrb[3].mxu1 }
  0xf9   :  { %v325_v30 = vmax.f32 %v213_v26, 0.0  ;;  %v333_v31 = vmax.f32 %v245_v27, 0.0 }
  0xfa   :  { %v480_v32 = vpack.c.bf16 %v327_v24, %v326_v22  ;;  %v500_v33 = vpack.c.bf16 %v335_v25, %v334_v23 }
  0xfb   :  { %v475_v34 = vpack.c.bf16 %v325_v30, %v324_v28  ;;  %v495_v35 = vpack.c.bf16 %v333_v31, %v332_v29 }
  0xfc   :  { %512 = vst [vmem:[%s688_s2 + $0x8] sm:$0xff] %v480_v32   ;;  %516 = vst [vmem:[%s688_s2 + $0x28] sm:$0xff] %v500_v33  }
  0xfd   :  { %476 = vst [vmem:[%s688_s2] sm:$0xff] %v475_v34   ;;  %515 = vst [vmem:[%s688_s2 + $0x20] sm:$0xff] %v495_v35   ;;  %v557_v36 = vpop.f32.mrb[4].mxu0  ;;  %v565_v37 = vpop.f32.mrb[4].mxu1 }
  0xfe   :  { %v226_v38 = vpop.f32.mrb[5].mxu0  ;;  %v258_v39 = vpop.f32.mrb[5].mxu1  ;;  %v330_v42 = vmax.f32 %v557_v36, 0.0  ;;  %v338_v43 = vmax.f32 %v565_v37, 0.0 }
  0xff   :  { %v558_v40 = vpop.f32.mrb[6].mxu0  ;;  %v566_v41 = vpop.f32.mrb[6].mxu1  ;;  %v328_v48 = vmax.f32 %v226_v38, 0.0  ;;  %v336_v49 = vmax.f32 %v258_v39, 0.0 }
 0x100   :  { %v331_v44 = vmax.f32 %v558_v40, 0.0  ;;  %v339_v45 = vmax.f32 %v566_v41, 0.0  ;;  %v229_v46 = vpop.f32.mrb[7].mxu0  ;;  %v261_v47 = vpop.f32.mrb[7].mxu1 }
 0x101   :  { %v329_v50 = vmax.f32 %v229_v46, 0.0  ;;  %v337_v51 = vmax.f32 %v261_v47, 0.0 }
 0x102   :  { %v490_v52 = vpack.c.bf16 %v331_v44, %v330_v42  ;;  %v510_v53 = vpack.c.bf16 %v339_v45, %v338_v43 }
 0x103   :  { %v485_v54 = vpack.c.bf16 %v329_v50, %v328_v48  ;;  %v505_v55 = vpack.c.bf16 %v337_v51, %v336_v49 }
 0x104   :  { %514 = vst [vmem:[%s688_s2 + $0x18] sm:$0xff] %v490_v52   ;;  %518 = vst [vmem:[%s688_s2 + $0x38] sm:$0xff] %v510_v53  }
 0x105   :  { %513 = vst [vmem:[%s688_s2 + $0x10] sm:$0xff] %v485_v54   ;;  %517 = vst [vmem:[%s688_s2 + $0x30] sm:$0xff] %v505_v55  }

</bundles_post_ra>
